<compile_context>
chip_gen: v7x
topology: tpu7x:2x2x1
jax: 0.10.0
libtpu: 0.0.40
codegen_flags: <defaults>
</compile_context>

<pallas_src>
import functools

import jax
import jax.numpy as jnp
from jax.experimental import pallas as pl
from jax.experimental.pallas import tpu as pltpu


def _round_up(x, m):
    return ((x + m - 1) // m) * m


# ----------------------------------------------------------------------------
# Glue: im2col (per conv path), weight packing, bilinear resize (state update)
# ----------------------------------------------------------------------------
def _im2col_nhwc(x, ksize, stride, pad):
    """x: (N,H,W,C) -> (N*Hout*Wout, 9*C) bf16 (true K), plus Hout, Wout."""
    n, h, w, c = x.shape
    xp = jnp.pad(x, ((0, 0), (pad, pad), (pad, pad), (0, 0)))
    hout = (h + 2 * pad - ksize) // stride + 1
    wout = (w + 2 * pad - ksize) // stride + 1
    cols = []
    for dh in range(ksize):
        for dw in range(ksize):
            cols.append(xp[:, dh:dh + stride * hout:stride,
                            dw:dw + stride * wout:stride, :])
    p = jnp.stack(cols, axis=3)                      # (N,Hout,Wout,k*k,C)
    p = p.reshape(n * hout * wout, ksize * ksize * c)
    return p.astype(jnp.bfloat16), hout, wout
# TODO(synk): longer-term, build the stride-1 im2col views in-kernel from an
# NHWC row block + halo instead of materializing (M, 9*C) slabs in HBM.


def _pack_gate_weight(w, ng):
    """PyTorch conv weight (4*cout, C, 3, 3) -> (9*C, ng) bf16.

    Gates stay contiguous (i,f,g,o each cout wide); only the TOTAL 4*cout is
    padded up to ng (a 128 multiple) so the matmul output is lane-dense.
    """
    o4, c, kh, kw = w.shape
    mat = jnp.transpose(w, (2, 3, 1, 0)).reshape(kh * kw * c, o4)
    if ng > o4:
        mat = jnp.pad(mat, ((0, 0), (0, ng - o4)))
    return mat.astype(jnp.bfloat16)


def _pack_bias(bias, ng):
    b = bias.reshape(1, -1).astype(jnp.float32)
    if ng > b.shape[1]:
        b = jnp.pad(b, ((0, 0), (0, ng - b.shape[1])))
    return b


def _bilinear_resize_nhwc(x, out_h, out_w):
    """F.interpolate(mode='bilinear', align_corners=False) on NHWC."""
    n, h, w, c = x.shape
    scale_h = h / out_h
    scale_w = w / out_w
    src_y = jnp.clip((jnp.arange(out_h, dtype=jnp.float32) + 0.5) * scale_h - 0.5,
                     0.0, None)
    src_x = jnp.clip((jnp.arange(out_w, dtype=jnp.float32) + 0.5) * scale_w - 0.5,
                     0.0, None)
    y0 = jnp.floor(src_y).astype(jnp.int32)
    x0 = jnp.floor(src_x).astype(jnp.int32)
    wy = (src_y - y0.astype(jnp.float32))[None, :, None, None]
    wx = (src_x - x0.astype(jnp.float32))[None, None, :, None]
    y1 = jnp.minimum(y0 + 1, h - 1)
    x1 = jnp.minimum(x0 + 1, w - 1)
    r0 = jnp.take(x, y0, axis=1)
    r1 = jnp.take(x, y1, axis=1)
    v00 = jnp.take(r0, x0, axis=2)
    v01 = jnp.take(r0, x1, axis=2)
    v10 = jnp.take(r1, x0, axis=2)
    v11 = jnp.take(r1, x1, axis=2)
    top = v00 * (1.0 - wx) + v01 * wx
    bot = v10 * (1.0 - wx) + v11 * wx
    return top * (1.0 - wy) + bot * wy


# ----------------------------------------------------------------------------
# Pallas kernel: fused multi-path gate matmul + ConvLSTM elementwise update
# ----------------------------------------------------------------------------
def _gate_kernel(*refs, n_in, cout):
    # refs = (a_0..a_{n_in-1}, w_0..w_{n_in-1}, b, c_prev, h_out, c_out)
    a_refs = refs[:n_in]
    w_refs = refs[n_in:2 * n_in]
    b_ref, c_ref, h_out_ref, c_out_ref = refs[2 * n_in:]

    # bf16 x bf16 -> f32 accumulation on the MXU.
    gates = jnp.dot(a_refs[0][...], w_refs[0][...],
                    preferred_element_type=jnp.float32)
    for a_r, w_r in zip(a_refs[1:], w_refs[1:]):
        gates = gates + jnp.dot(a_r[...], w_r[...],
                                preferred_element_type=jnp.float32)
    gates = gates + b_ref[...]

    # Gates are packed contiguously (i,f,g,o each cout wide); slices are
    # static, so only a small lane-select per gate.  Elementwise math in f32.
    i_g = jax.nn.sigmoid(gates[:, 0 * cout:1 * cout])
    f_g = jax.nn.sigmoid(gates[:, 1 * cout:2 * cout])
    g_g = jnp.tanh(gates[:, 2 * cout:3 * cout])
    o_g = jax.nn.sigmoid(gates[:, 3 * cout:4 * cout])

    c_new = f_g * c_ref[...] + i_g * g_g
    c_out_ref[...] = c_new
    h_out_ref[...] = o_g * jnp.tanh(c_new)


def _vmem_cap_bytes():
    """Generation-aware VMEM budget: ~0.75x physical (96 MiB v5e/v6e, 48 v7x)."""
    try:
        info = pltpu.get_tpu_info()
        phys = getattr(info, "vmem_capacity_bytes", None)
        if phys:
            return int(phys) * 3 // 4
    except Exception:
        pass
    return 48 << 20  # safe on every generation (v7x has 64 MiB physical)


def convlstm_gates(a_list, w_list, b, c_prev):
    """a_list[p]:(M,K_p) bf16, w_list[p]:(K_p,NG) bf16, b:(1,NG) f32,
    c_prev:(M,cout) f32  ->  (h, c) each (M, cout) f32."""
    n_in = len(a_list)
    m = a_list[0].shape[0]
    cout = c_prev.shape[-1]
    ng = w_list[0].shape[-1]
    k_list = [a.shape[1] for a in a_list]
    k_total = sum(k_list)

    # --- M tiling: multiple of 16 (bf16 sublane packing); aim for >=4 tiles
    # so the pipeline overlaps DMA/compute and megacore has work per core. ----
    m16 = _round_up(m, 16)
    tm = min(512, max(16, _round_up(pl.cdiv(m16, 4), 16)))

    vmem_cap = _vmem_cap_bytes()

    def est_bytes(tm_):
        return (2 * tm_ * k_total * 2           # double-buffered A slabs (bf16)
                + 2 * tm_ * cout * 4            # double-buffered c_prev
                + 4 * tm_ * cout * 4            # double-buffered h/c outputs
                + k_total * ng * 2 + ng * 4     # resident (1-buffered) W + bias
                + 4 * tm_ * ng * 4              # gates + activation temporaries
                + (2 << 20))                    # headroom

    while est_bytes(tm) > vmem_cap and tm > 16:  # shrink TM if over budget
        tm = max(16, _round_up(tm // 2, 16))
    # TODO(synk): for production channel counts where resident weights alone
    # exceed VMEM, add a K grid axis ("arbitrary") streaming weight tiles into
    # an f32 gates accumulator instead of only shrinking TM.

    m_pad = _round_up(m16, tm)
    if m_pad > m:
        a_list = [jnp.pad(a, ((0, m_pad - m), (0, 0))) for a in a_list]
        c_prev = jnp.pad(c_prev, ((0, m_pad - m), (0, 0)))

    # --- Block specs (A / c tiles use true K / true cout: full-array dims
    # are exempt from the (8,128) divisibility rule; Mosaic pads in VMEM). ----
    in_specs = []
    for kp in k_list:
        in_specs.append(pl.BlockSpec((tm, kp), lambda i: (i, 0)))
    for w in w_list:                                   # resident weights
        in_specs.append(pl.BlockSpec(w.shape, lambda i: (0, 0),
                                     pipeline_mode=pl.Buffered(1)))
    in_specs.append(pl.BlockSpec((1, ng), lambda i: (0, 0),
                                 pipeline_mode=pl.Buffered(1)))   # bias
    in_specs.append(pl.BlockSpec((tm, cout), lambda i: (i, 0)))   # c_prev

    out_specs = (pl.BlockSpec((tm, cout), lambda i: (i, 0)),
                 pl.BlockSpec((tm, cout), lambda i: (i, 0)))

    vmem_bytes = int(min(max(est_bytes(tm), 8 << 20), vmem_cap))

    cost = pl.CostEstimate(
        flops=int(2 * m_pad * k_total * ng + 10 * m_pad * cout),
        transcendentals=int(5 * m_pad * cout),
        bytes_accessed=int(m_pad * k_total * 2 + k_total * ng * 2
                           + 3 * m_pad * cout * 4),
    )

    h_pad, c_new_pad = pl.pallas_call(
        functools.partial(_gate_kernel, n_in=n_in, cout=cout),
        out_shape=(jax.ShapeDtypeStruct((m_pad, cout), jnp.float32),
                   jax.ShapeDtypeStruct((m_pad, cout), jnp.float32)),
        grid=(m_pad // tm,),
        in_specs=in_specs,
        out_specs=out_specs,
        compiler_params=pltpu.CompilerParams(
            dimension_semantics=("parallel",),
            vmem_limit_bytes=vmem_bytes),
        cost_estimate=cost,
    )(*a_list, *w_list, b, c_prev)

    return h_pad[:m], c_new_pad[:m]


# ----------------------------------------------------------------------------
# ConvLSTM cell step + Feedback forward
# ----------------------------------------------------------------------------
def convlstm_cell_step(params, x_nhwc, state):
    a_x, hout, wout = _im2col_nhwc(x_nhwc, 3, 2, 1)        # stride-2 input path
    a_h, _, _ = _im2col_nhwc(state["h"], 3, 1, 1)          # stride-1 hidden path
    a_list = [a_x, a_h]
    w_list = [params["Wx"], params["Wh"]]
    if state["fb"] is not None:
        a_fb, _, _ = _im2col_nhwc(state["fb"], 3, 1, 1)    # stride-1 feedback
        a_list.append(a_fb)
        w_list.append(params["Wfb"])

    n = x_nhwc.shape[0]
    cout = state["h"].shape[-1]
    c_prev = state["c"].reshape(-1, cout)

    h_flat, c_flat = convlstm_gates(a_list, w_list, params["b"], c_prev)
    h = h_flat.reshape(n, hout, wout, cout)
    c = c_flat.reshape(n, hout, wout, cout)
    return h, c


def feedback_forward(params_list, states, x_nchw):
    """Mirrors Feedback.forward.  Returns (list of NCHW outputs, new states)."""
    x = jnp.transpose(x_nchw, (0, 2, 3, 1))              # NCHW -> NHWC
    out = []
    new_states = []
    for params, st in zip(params_list, states):
        h, c = convlstm_cell_step(params, x, st)
        new_states.append({"h": h, "c": c, "fb": st["fb"]})
        out.append(h)
        x = h
    # self.downs[l].prev_fb = resize(self.downs[l+1].prev_h, downs[l].prev_h spatial)
    for l in range(len(new_states) - 1):
        th, tw = new_states[l]["h"].shape[1:3]
        new_states[l]["fb"] = _bilinear_resize_nhwc(new_states[l + 1]["h"], th, tw)
    out_nchw = [jnp.transpose(o, (0, 3, 1, 2)) for o in out]
    return out_nchw, new_states


# ----------------------------------------------------------------------------
# Deterministic parameter / state construction
# ----------------------------------------------------------------------------
def init_feedback(channel_list, n, h, w, key):
    params_list, states = [], []
    levels = len(channel_list) - 1
    h_sp, w_sp = h, w
    for i in range(levels):
        cin = channel_list[i]
        cout = channel_list[i + 1]
        cfb = channel_list[i + 2] if i < levels - 1 else None
        h_out = (h_sp + 2 - 3) // 2 + 1
        w_out = (w_sp + 2 - 3) // 2 + 1
        ng = _round_up(4 * cout, 128)
        key, k1, k2, k3, k4 = jax.random.split(key, 5)
        wx = 0.1 * jax.random.normal(k1, (4 * cout, cin, 3, 3), jnp.float32)
        wh = 0.1 * jax.random.normal(k2, (4 * cout, cout, 3, 3), jnp.float32)
        bias = 0.05 * jax.random.normal(k4, (4 * cout,), jnp.float32)
        params = {
            "Wx": _pack_gate_weight(wx, ng),
            "Wh": _pack_gate_weight(wh, ng),
            "b": _pack_bias(bias, ng),
        }
        if cfb is not None:
            wfb = 0.1 * jax.random.normal(k3, (4 * cout, cfb, 3, 3), jnp.float32)
            params["Wfb"] = _pack_gate_weight(wfb, ng)
        params_list.append(params)
        states.append({
            "h": jnp.zeros((n, h_out, w_out, cout), jnp.float32),
            "c": jnp.zeros((n, h_out, w_out, cout), jnp.float32),
            "fb": (jnp.zeros((n, h_out, w_out, cfb), jnp.float32)
                   if cfb is not None else None),
        })
        h_sp, w_sp = h_out, w_out
    return params_list, states, key


# TODO(synk): ConvLSTMCell source was not provided; a standard ConvLSTM cell
# (3x3, i/f/g/o gate order, one pre-summed bias, zero-initialized state,
# stride-2 only on the x path) is assumed.

if __name__ == "__main__":
    key = jax.random.PRNGKey(0)
    channel_list = [4, 8, 16, 32]
    N, H, W = 2, 16, 16

    params_list, states, key = init_feedback(channel_list, N, H, W, key)
    key, kx = jax.random.split(key)
    x = jax.random.normal(kx, (N, channel_list[0], H, W), jnp.float32)

    out, new_states = feedback_forward(params_list, states, x)
    jax.block_until_ready(out)

    # sanity: 3 pyramid levels, halving spatial dims each time (NCHW)
    assert [o.shape for o in out] == [(2, 8, 8, 8), (2, 16, 4, 4), (2, 32, 2, 2)]
    for o in out:
        assert bool(jnp.all(jnp.isfinite(o)))
    print("KERNEL_OK")
</pallas_src>

<mosaic_0001>
module attributes {stable_mosaic.version = 11 : i64} {
  func.func @_gate_kernel(%arg0: i32, %arg1: memref<32x36xbf16, #tpu.memory_space<vmem>>, %arg2: memref<32x72xbf16, #tpu.memory_space<vmem>>, %arg3: memref<32x144xbf16, #tpu.memory_space<vmem>>, %arg4: memref<36x128xbf16, #tpu.memory_space<vmem>>, %arg5: memref<72x128xbf16, #tpu.memory_space<vmem>>, %arg6: memref<144x128xbf16, #tpu.memory_space<vmem>>, %arg7: memref<1x128xf32, #tpu.memory_space<vmem>>, %arg8: memref<32x8xf32, #tpu.memory_space<vmem>>, %arg9: memref<32x8xf32, #tpu.memory_space<vmem>>, %arg10: memref<32x8xf32, #tpu.memory_space<vmem>>) attributes {dimension_semantics = [#tpu.dimension_semantics<parallel>], iteration_bounds = array<i64: 4>, scalar_prefetch = 0 : i64, scratch_operands = 0 : i64, tpu.core_type = #tpu.core_type<tc>, window_params = [{transform_indices = @transform_0, window_bounds = array<i64: 32, 36>}, {transform_indices = @transform_1, window_bounds = array<i64: 32, 72>}, {transform_indices = @transform_2, window_bounds = array<i64: 32, 144>}, {pipeline_mode = #tpu.pipeline_mode<synchronous>, transform_indices = @transform_3, window_bounds = array<i64: 36, 128>}, {pipeline_mode = #tpu.pipeline_mode<synchronous>, transform_indices = @transform_4, window_bounds = array<i64: 72, 128>}, {pipeline_mode = #tpu.pipeline_mode<synchronous>, transform_indices = @transform_5, window_bounds = array<i64: 144, 128>}, {pipeline_mode = #tpu.pipeline_mode<synchronous>, transform_indices = @transform_6, window_bounds = array<i64: 1, 128>}, {transform_indices = @transform_7, window_bounds = array<i64: 32, 8>}, {transform_indices = @transform_8, window_bounds = array<i64: 32, 8>}, {transform_indices = @transform_9, window_bounds = array<i64: 32, 8>}]} {
    %c0 = arith.constant 0 : index
    %c0_0 = arith.constant 0 : index
    %0 = vector.load %arg1[%c0, %c0_0] : memref<32x36xbf16, #tpu.memory_space<vmem>>, vector<32x36xbf16>
    %c0_1 = arith.constant 0 : index
    %c0_2 = arith.constant 0 : index
    %1 = vector.load %arg4[%c0_1, %c0_2] : memref<36x128xbf16, #tpu.memory_space<vmem>>, vector<36x128xbf16>
    %cst = arith.constant dense<0.000000e+00> : vector<32x128xf32>
    %2 = tpu.matmul %0, %1, %cst {dimension_numbers = #tpu.dot_dimension_numbers<[1], [0], [0], [1], [0, 0, 1, 1], [], []>} : vector<32x36xbf16>, vector<36x128xbf16>, vector<32x128xf32> -> vector<32x128xf32>
    %c0_3 = arith.constant 0 : index
    %c0_4 = arith.constant 0 : index
    %3 = vector.load %arg2[%c0_3, %c0_4] : memref<32x72xbf16, #tpu.memory_space<vmem>>, vector<32x72xbf16>
    %c0_5 = arith.constant 0 : index
    %c0_6 = arith.constant 0 : index
    %4 = vector.load %arg5[%c0_5, %c0_6] : memref<72x128xbf16, #tpu.memory_space<vmem>>, vector<72x128xbf16>
    %cst_7 = arith.constant dense<0.000000e+00> : vector<32x128xf32>
    %5 = tpu.matmul %3, %4, %cst_7 {dimension_numbers = #tpu.dot_dimension_numbers<[1], [0], [0], [1], [0, 0, 1, 1], [], []>} : vector<32x72xbf16>, vector<72x128xbf16>, vector<32x128xf32> -> vector<32x128xf32>
    %6 = arith.addf %2, %5 : vector<32x128xf32>
    %c0_8 = arith.constant 0 : index
    %c0_9 = arith.constant 0 : index
    %7 = vector.load %arg3[%c0_8, %c0_9] : memref<32x144xbf16, #tpu.memory_space<vmem>>, vector<32x144xbf16>
    %c0_10 = arith.constant 0 : index
    %c0_11 = arith.constant 0 : index
    %8 = vector.load %arg6[%c0_10, %c0_11] : memref<144x128xbf16, #tpu.memory_space<vmem>>, vector<144x128xbf16>
    %cst_12 = arith.constant dense<0.000000e+00> : vector<32x128xf32>
    %9 = tpu.matmul %7, %8, %cst_12 {dimension_numbers = #tpu.dot_dimension_numbers<[1], [0], [0], [1], [0, 0, 1, 1], [], []>} : vector<32x144xbf16>, vector<144x128xbf16>, vector<32x128xf32> -> vector<32x128xf32>
    %10 = arith.addf %6, %9 : vector<32x128xf32>
    %c0_13 = arith.constant 0 : index
    %c0_14 = arith.constant 0 : index
    %11 = vector.load %arg7[%c0_13, %c0_14] : memref<1x128xf32, #tpu.memory_space<vmem>>, vector<1x128xf32>
    %12 = vector.broadcast %11 : vector<1x128xf32> to vector<32x128xf32>
    %13 = arith.addf %10, %12 : vector<32x128xf32>
    %14 = vector.extract_strided_slice %13 {offsets = [0, 0], sizes = [32, 8], strides = [1, 1]} : vector<32x128xf32> to vector<32x8xf32>
    %15 = arith.negf %14 : vector<32x8xf32>
    %16 = math.exp %15 : vector<32x8xf32>
    %cst_15 = arith.constant 1.000000e+00 : f32
    %17 = vector.broadcast %cst_15 : f32 to vector<32x8xf32>
    %18 = arith.addf %17, %16 : vector<32x8xf32>
    %19 = arith.divf %17, %18 : vector<32x8xf32>
    %20 = vector.extract_strided_slice %13 {offsets = [0, 8], sizes = [32, 8], strides = [1, 1]} : vector<32x128xf32> to vector<32x8xf32>
    %21 = arith.negf %20 : vector<32x8xf32>
    %22 = math.exp %21 : vector<32x8xf32>
    %cst_16 = arith.constant 1.000000e+00 : f32
    %23 = vector.broadcast %cst_16 : f32 to vector<32x8xf32>
    %24 = arith.addf %23, %22 : vector<32x8xf32>
    %25 = arith.divf %23, %24 : vector<32x8xf32>
    %26 = vector.extract_strided_slice %13 {offsets = [0, 16], sizes = [32, 8], strides = [1, 1]} : vector<32x128xf32> to vector<32x8xf32>
    %27 = math.tanh %26 : vector<32x8xf32>
    %28 = vector.extract_strided_slice %13 {offsets = [0, 24], sizes = [32, 8], strides = [1, 1]} : vector<32x128xf32> to vector<32x8xf32>
    %29 = arith.negf %28 : vector<32x8xf32>
    %30 = math.exp %29 : vector<32x8xf32>
    %cst_17 = arith.constant 1.000000e+00 : f32
    %31 = vector.broadcast %cst_17 : f32 to vector<32x8xf32>
    %32 = arith.addf %31, %30 : vector<32x8xf32>
    %33 = arith.divf %31, %32 : vector<32x8xf32>
    %c0_18 = arith.constant 0 : index
    %c0_19 = arith.constant 0 : index
    %34 = vector.load %arg8[%c0_18, %c0_19] : memref<32x8xf32, #tpu.memory_space<vmem>>, vector<32x8xf32>
    %35 = arith.mulf %25, %34 : vector<32x8xf32>
    %36 = arith.mulf %19, %27 : vector<32x8xf32>
    %37 = arith.addf %35, %36 : vector<32x8xf32>
    %c0_20 = arith.constant 0 : index
    %c0_21 = arith.constant 0 : index
    %38 = vector.load %arg10[%c0_20, %c0_21] : memref<32x8xf32, #tpu.memory_space<vmem>>, vector<32x8xf32>
    tpu.vector_store %arg10[%c0_20, %c0_21], %37 {strides = array<i32>} : memref<32x8xf32, #tpu.memory_space<vmem>>, vector<32x8xf32>,
    %39 = math.tanh %37 : vector<32x8xf32>
    %40 = arith.mulf %33, %39 : vector<32x8xf32>
    %c0_22 = arith.constant 0 : index
    %c0_23 = arith.constant 0 : index
    %41 = vector.load %arg9[%c0_22, %c0_23] : memref<32x8xf32, #tpu.memory_space<vmem>>, vector<32x8xf32>
    tpu.vector_store %arg9[%c0_22, %c0_23], %40 {strides = array<i32>} : memref<32x8xf32, #tpu.memory_space<vmem>>, vector<32x8xf32>,
    return
  }
  func.func @transform_0(%arg0: i32) -> (i32, i32) {
    %c0_i32 = arith.constant 0 : i32
    %c0_i32_0 = arith.constant 0 : i32
    return %arg0, %c0_i32 : i32, i32
  }
  func.func @transform_1(%arg0: i32) -> (i32, i32) {
    %c0_i32 = arith.constant 0 : i32
    %c0_i32_0 = arith.constant 0 : i32
    return %arg0, %c0_i32 : i32, i32
  }
  func.func @transform_2(%arg0: i32) -> (i32, i32) {
    %c0_i32 = arith.constant 0 : i32
    %c0_i32_0 = arith.constant 0 : i32
    return %arg0, %c0_i32 : i32, i32
  }
  func.func @transform_3(%arg0: i32) -> (i32, i32) {
    %c0_i32 = arith.constant 0 : i32
    %c0_i32_0 = arith.constant 0 : i32
    %c0_i32_1 = arith.constant 0 : i32
    return %c0_i32, %c0_i32_0 : i32, i32
  }
  func.func @transform_4(%arg0: i32) -> (i32, i32) {
    %c0_i32 = arith.constant 0 : i32
    %c0_i32_0 = arith.constant 0 : i32
    %c0_i32_1 = arith.constant 0 : i32
    return %c0_i32, %c0_i32_0 : i32, i32
  }
  func.func @transform_5(%arg0: i32) -> (i32, i32) {
    %c0_i32 = arith.constant 0 : i32
    %c0_i32_0 = arith.constant 0 : i32
    %c0_i32_1 = arith.constant 0 : i32
    return %c0_i32, %c0_i32_0 : i32, i32
  }
  func.func @transform_6(%arg0: i32) -> (i32, i32) {
    %c0_i32 = arith.constant 0 : i32
    %c0_i32_0 = arith.constant 0 : i32
    %c0_i32_1 = arith.constant 0 : i32
    return %c0_i32, %c0_i32_0 : i32, i32
  }
  func.func @transform_7(%arg0: i32) -> (i32, i32) {
    %c0_i32 = arith.constant 0 : i32
    %c0_i32_0 = arith.constant 0 : i32
    return %arg0, %c0_i32 : i32, i32
  }
  func.func @transform_8(%arg0: i32) -> (i32, i32) {
    %c0_i32 = arith.constant 0 : i32
    %c0_i32_0 = arith.constant 0 : i32
    return %arg0, %c0_i32 : i32, i32
  }
  func.func @transform_9(%arg0: i32) -> (i32, i32) {
    %c0_i32 = arith.constant 0 : i32
    %c0_i32_0 = arith.constant 0 : i32
    return %arg0, %c0_i32 : i32, i32
  }
}

</mosaic_0001>

<bundles_post_ra>
// kernel: tpu_custom_call.1
= control target key start
LH: loop header
LB: loop body
LE: loop exit
PB: predicated region body
PF: predicated region fallthrough
CT: control target
= control target key end

     0   :  { %s1308_s30 = smov 0   ;;  %s1438_s0 = inlined_call_operand.vmem [shape: bf16[128,36], index: 0, kind: input, shape index: {}]   ;;  %s1439_s1 = inlined_call_operand.vmem [shape: bf16[128,72], index: 1, kind: input, shape index: {}]   ;;  %s1440_s2 = inlined_call_operand.vmem [shape: bf16[128,144], index: 2, kind: input, shape index: {}]   ;;  %s1441_s3 = inlined_call_operand.vmem [shape: bf16[36,128], index: 3, kind: input, shape index: {}]   ;;  %s1442_s4 = inlined_call_operand.vmem [shape: bf16[72,128], index: 4, kind: input, shape index: {}]   ;;  %s1443_s5 = inlined_call_operand.vmem [shape: bf16[144,128], index: 5, kind: input, shape index: {}]   ;;  %s1444_s6 = inlined_call_operand.vmem [shape: f32[1,128], index: 6, kind: input, shape index: {}]   ;;  %s1445_s7 = inlined_call_operand.vmem [shape: f32[128,8], index: 7, kind: input, shape index: {}]   ;;  %s1446_s8 = inlined_call_operand.vmem [shape: f32[128,8], index: 8, kind: output, shape index: {0}]   ;;  %s1447_s9 = inlined_call_operand.vmem [shape: f32[128,8], index: 9, kind: output, shape index: {1}]  }
   0x1 LB: > { %s1072_s10 = sadd.s32 4294967295, %s1250_s30   ;;  %p1076_p0 = scmp.ge.s32.totalorder %s1250_s30, 1  ;;  %s1250_s30 = sphi %s1308_s30, %s20_s30  }
   0x2   : > { %p325_p1 = scmp.lt.s32.totalorder %s1250_s30, 5 }
   0x4   : > { %p326_p2 = pnand %p1076_p0, %p325_p1 }
   0x5   : > { %v1185_v0 = vld [vmem:[%s1442_s4] sm:$0xff] (!%p326_p2)   ;;  %v1252_v1 = vmov (!%p326_p2), 0   ;;  %v1187_v3 = vld [vmem:[%s1442_s4 + $0x8] sm:$0xff] (!%p326_p2)   ;;  %s1077_s17 = sshll.u32 (!%p326_p2), %s1072_s10, 2  ;;  %v1189_v5 = vld [vmem:[%s1442_s4 + $0x10] sm:$0xff] (!%p326_p2)   ;;  %vm479_vm0 = vcmask (!%p326_p2), 588800  }
   0x6   : > { %329 = sbr.rel (%p326_p2) target bundleno = 759 (0x2f7), region = 52  ;;  %725 = vmatprep.subr.bf16.mxu1 (!%p326_p2), %v1252_v1  ;;  %v1186_v2 = vld [vmem:[%s1443_s5] sm:$0xff] (!%p326_p2)   ;;  %1141 = vmatprep.subr.bf16.mxu0 (!%p326_p2), %v1185_v0  ;;  %v1188_v4 = vld [vmem:[%s1443_s5 + $0x8] sm:$0xff] (!%p326_p2)   ;;  %p383_p3 = scmp.lt.s32.totalorder (!%p326_p2), %s1077_s17, 15  ;;  %v1190_v6 = vld [vmem:[%s1443_s5 + $0x10] sm:$0xff] (!%p326_p2)   ;;  %vm486_vm1 = vcmask (!%p326_p2), 1043456  }
   0x7   : > { %726 = vmatpush1.bf16.msra.mxu1 (!%p326_p2), %v1186_v2  ;;  %1142 = vmatpush3.bf16.msra.mxu0 (!%p326_p2), %v1185_v0  ;;  %v1191_v7 = vld [vmem:[%s1442_s4 + $0x18] sm:$0xff] (!%p326_p2)   ;;  %v1193_v10 = vld [vmem:[%s1442_s4 + $0x20] ss:$0 sps:$4 sm:$0xff] (!%p326_p2)   ;;  %v1198_v15 = vld [vmem:[%s1443_s5 + $0x28] sm:$0xff] (!%p326_p2)   ;;  %vm564_vm2 = vcmask (!%p326_p2), 293888   ;;  %vm718_vm3 = vcmask (!%p326_p2), 130048  }
   0x8   : > { %727 = vmatprep.subr.bf16.mxu1 (!%p326_p2), %v1252_v1  ;;  %1143 = vmatprep.subr.bf16.mxu0 (!%p326_p2), %v1187_v3  ;;  %v1192_v8 = vld [vmem:[%s1443_s5 + $0x18] sm:$0xff] (!%p326_p2)   ;;  %v1194_v11 = vld [vmem:[%s1443_s5 + $0x20] sm:$0xff] (!%p326_p2)   ;;  %v488_v12 = vsel (!%p326_p2), %vm486_vm1, %v1193_v10, 0  ;;  %v1199_v16 = vld [vmem:[%s1441_s3 + $0x8] sm:$0xff] (!%p326_p2)   ;;  %vm571_vm4 = vcmask (!%p326_p2), 1041408   ;;  %s1253_s21 = smov (!%p326_p2), 112  }
   0x9   : > { %v1197_v13 = vld [vmem:[%s1441_s3] sm:$0xff] (!%p326_p2)   ;;  %v1200_v19 = vld [vmem:[%s1443_s5 + $0x30] sm:$0xff] (!%p326_p2)   ;;  %v1202_v21 = vld [vmem:[%s1443_s5 + $0x38] sm:$0xff] (!%p326_p2)   ;;  %s1256_s26 = smov (!%p326_p2), 120   ;;  %s1257_s27 = smov (!%p326_p2), 104   ;;  %vm897_vm5 = vcmask (!%p326_p2), 64512  }
   0xa   : > { %v1201_v20 = vld [vmem:[%s1441_s3 + $0x10] ss:$0 sps:$4 sm:$0x33] (!%p326_p2)   ;;  %v1205_v24 = vld [vmem:[%s1443_s5 + $0x40] sm:$0xff] (!%p326_p2)  }
   0xb   : > { %728 = vmatpush1.bf16.msra.mxu1 (!%p326_p2), %v1188_v4  ;;  %1144 = vmatpush3.bf16.msra.mxu0 (!%p326_p2), %v1187_v3  ;;  %v573_v22 = vsel (!%p326_p2), %vm571_vm4, %v1201_v20, 0  ;;  %v1121_v33 = vld [vmem:[%s1444_s6] ss:$0 sm:$0xff] (!%p326_p2) }
   0xc   : > { %729 = vmatprep.subr.bf16.mxu1 (!%p326_p2), %v1252_v1  ;;  %1145 = vmatprep.subr.bf16.mxu0 (!%p326_p2), %v1189_v5 }
   0xd   : > { %s1449_s17 = smov (!%p383_p3, %s1077_s17), 15 }
   0xe   : > { %s1078_s24 = sshll.u32 %s1449_s17, 2  ;;  %s1359_s20 = sshll.u32 %s1449_s17, 3 }
   0xf   : > { %s1343_s29 = scalar_lea.vmem %s1438_s0, %s1078_s24  ;;  %s392_s12 = scalar_lea.vmem %s1439_s1, %s1078_s24  ;;  %730 = vmatpush1.bf16.msra.mxu1 %v1190_v6  ;;  %1146 = vmatpush3.bf16.msra.mxu0 %v1189_v5 }
  0x10   : > { %v1195_v9 = vld [vmem:[%s392_s12] sm:$0xff]   ;;  %731 = vmatprep.subr.bf16.mxu1 %v1252_v1  ;;  %1147 = vmatprep.subr.bf16.mxu0 %v1191_v7  ;;  %v1196_v14 = vld [vmem:[%s392_s12 + $0x8] sm:$0xff]   ;;  %s1369_s25 = scalar_lea.vmem %s1440_s2, %s1359_s20  ;;  %s405_s24 = scalar_lea.vmem %s1445_s7, %s1359_s20 }
  0x11   : > { %1151 = vmatprep.mubr.msk.bf16.mxu0 %vm479_vm0, %v1195_v9  ;;  %v1203_v17 = vld [vmem:[%s1343_s29] sm:$0xff]   ;;  %v1204_v23 = vld [vmem:[%s1343_s29 + $0x8] sm:$0xff]   ;;  %v1209_v26 = vld [vmem:[%s1369_s25 + $0x14] ss:$8 sps:$4 sm:$0xff]   ;;  %s1255_s17 = smov 16   ;;  %s417_s11 = scalar_lea.vmem %s1447_s9, %s1359_s20 }
  0x12   : > { %v1208_v18 = vld [vmem:[%s1369_s25 + $0x4] ss:$8 sps:$4 sm:$0xff]   ;;  %v1206_v25 = vld [vmem:[%s1369_s25] ss:$8 sps:$4 sm:$0xff]   ;;  %v1211_v27 = vld [vmem:[%s1369_s25 + $0x10] ss:$8 sps:$4 sm:$0xff]   ;;  %s411_s14 = scalar_lea.vmem %s1446_s8, %s1359_s20 }
  0x13   : > { %732 = vmatpush1.bf16.msra.mxu1 %v1192_v8  ;;  %1148 = vmatpush3.bf16.msra.mxu0 %v1191_v7  ;;  %v817_v51 = vld [vmem:[%s405_s24] sm:$0xff]  ;;  %s1254_s25 = smov 8   ;;  %v819_v53 = vld [vmem:[%s405_s24 + $0x10] sm:$0xff]  ;;  %v818_v55 = vld [vmem:[%s405_s24 + $0x8] sm:$0xff] }
  0x14   : > { %733 = vmatprep.subr.bf16.mxu1 %v1252_v1  ;;  %1169 = vmatprep.subr.msk.bf16.mxu0 %vm486_vm1, %v1193_v10  ;;  %v820_v56 = vld [vmem:[%s405_s24 + $0x18] sm:$0xff] }
  0x15   : > { %1119 = vmatprep.mubr.msk.bf16.mxu1 %vm718_vm3, %v1208_v18 }
  0x17   : > { %734 = vmatpush1.bf16.msra.mxu1 %v1194_v11  ;;  %1150 = vmatpush3.bf16.msra.mxu0 %v488_v12 }
  0x18   : > { %735 = vmatprep.subr.bf16.mxu1 %v1252_v1  ;;  %1155 = vmatprep.subr.bf16.mxu0 %v1197_v13 }
  0x1a   : > { %1152 = vmatmul.mubr.msk.bf16.vlgmr.msra.gmra.mrb[0].mxu0 %vm479_vm0, %v1196_v14 }
  0x1b   : > { %736 = vmatpush1.bf16.msra.mxu1 %v1198_v15  ;;  %1156 = vmatpush3.bf16.msra.mxu0 %v1197_v13 }
  0x1c   : > { %737 = vmatprep.subr.bf16.mxu1 %v1252_v1  ;;  %1157 = vmatprep.subr.bf16.mxu0 %v1199_v16 }
  0x1d   : > { %1161 = vmatprep.mubr.msk.bf16.mxu0 %vm564_vm2, %v1203_v17 }
  0x1f   : > { %738 = vmatpush1.bf16.msra.mxu1 %v1200_v19  ;;  %1158 = vmatpush3.bf16.msra.mxu0 %v1199_v16 }
  0x20   : > { %739 = vmatprep.subr.bf16.mxu1 %v1252_v1  ;;  %1170 = vmatprep.subr.msk.bf16.mxu0 %vm571_vm4, %v1201_v20 }
  0x23   : > { %740 = vmatpush1.bf16.msra.mxu1 %v1202_v21  ;;  %1160 = vmatpush3.bf16.msra.mxu0 %v573_v22 }
  0x24   : > { %741 = vmatprep.subr.bf16.mxu1 %v1252_v1 }
  0x26   : > { %1162 = vmatmul.mubr.msk.bf16.vlgmr.msra.gmra.mrb[0].mxu0 %vm564_vm2, %v1204_v23 }
  0x27   : > { %742 = vmatpush1.bf16.msra.mxu1 %v1205_v24 }
  0x2a   : > { %758 = vmatmul.mubr.bf16.vlgmr.msra.gmra.mrb[0].mxu1 %v1206_v25 }
  0x2b   : > { %1120 = vmatprep.mubr.msk.bf16.mxu1 %vm718_vm3, %v1209_v26 }
  0x32   : > { %766 = vmatmul.mubr.bf16.gmra.mrb[4].mxu1 %v1211_v27 }
  0xf9   : > { %v1163_v28 = vpop.f32.mrb[0].mxu0 }
  0xfa   : > { %v609_v29 = vpop.f32.mrb[1].mxu0 }
  0xfb   : > { %v1164_v30 = vpop.f32.mrb[2].mxu0 }
  0xfc   : > { %v612_v31 = vpop.f32.mrb[3].mxu0 }
  0xfd   : > { %v759_v32 = vpop.f32.mrb[0].mxu1 }
  0xfe   : > { %v774_v34 = vadd.f32 %v759_v32, %v609_v29  ;;  %v761_v35 = vpop.f32.mrb[1].mxu1 }
  0xff   : > { %v762_v36 = vpop.f32.mrb[2].mxu1 }
 0x100   : > { %v785_v37 = vadd.f32 %v1121_v33, %v774_v34  ;;  %v775_v38 = vadd.f32 %v762_v36, %v612_v31  ;;  %v764_v39 = vpop.f32.mrb[3].mxu1 }
 0x102   : > { %1212 = vtanh.f32 %v785_v37  ;;  %v786_v40 = vadd.f32 %v1121_v33, %v775_v38  ;;  %v1122_v57 = vmul.f32 -1.442695, %v785_v37 }
 0x104   : > { %1214 = vtanh.f32 %v786_v40  ;;  %v1123_v58 = vmul.f32 -1.442695, %v786_v40 }
 0x105   : > { %v767_v41 = vpop.f32.mrb[4].mxu1 }
 0x106   : > { %v776_v42 = vadd.f32 %v1163_v28, %v767_v41  ;;  %v769_v43 = vpop.f32.mrb[5].mxu1 }
 0x107   : > { %v770_v44 = vpop.f32.mrb[6].mxu1 }
 0x108   : > { %v787_v45 = vadd.f32 %v1121_v33, %v776_v42  ;;  %v777_v46 = vadd.f32 %v1164_v30, %v770_v44  ;;  %v772_v47 = vpop.f32.mrb[7].mxu1 }
 0x10a   : > { %1216 = vtanh.f32 %v787_v45  ;;  %v788_v48 = vadd.f32 %v1121_v33, %v777_v46  ;;  %v1124_v59 = vmul.f32 -1.442695, %v787_v45 }
 0x10c   : > { %v1213_v49 = vpop.eup %1212  ;;  %1218 = vtanh.f32 %v788_v48  ;;  %v1125_v60 = vmul.f32 -1.442695, %v788_v48 }
 0x10d   : > { %845 = vrot.lane.b32.xlu0 %v1213_v49, %s1253_s21  ;;  %1220 = vpow2.f32 %v1122_v57 }
 0x10e   : > { %v1215_v50 = vpop.eup %1214  ;;  %1222 = vpow2.f32 %v1123_v58 }
 0x10f   : > { %1224 = vpow2.f32 %v1124_v59 }
 0x110   : > { %1226 = vpow2.f32 %v1125_v60 }
 0x111   : > { %847 = vrot.lane.b32.xlu0 %v1215_v50, %s1253_s21 }
 0x114   : > { %v1217_v52 = vpop.eup %1216 }
 0x115   : > { %849 = vrot.lane.b32.xlu1 %v1217_v52, %s1253_s21  ;;  %825 = vrot.lane.b32.xlu0 %v817_v51, %s1254_s25 }
 0x116   : > { %v1219_v54 = vpop.eup %1218 }
 0x117   : > { %v1221_v61 = vpop.eup %1220 }
 0x118   : > { %v801_v62 = vadd.f32 1.0, %v1221_v61  ;;  %v1223_v63 = vpop.eup %1222 }
 0x119   : > { %851 = vrot.lane.b32.xlu1 %v1219_v54, %s1253_s21  ;;  %829 = vrot.lane.b32.xlu0 %v819_v53, %s1254_s25  ;;  %v802_v0 = vadd.f32 1.0, %v1223_v63  ;;  %v1225_v1 = vpop.eup %1224 }
 0x11a   : > { %1228 = vrcp.f32 %v801_v62  ;;  %v803_v2 = vadd.f32 1.0, %v1225_v1  ;;  %v1227_v3 = vpop.eup %1226 }
 0x11b   : > { %1230 = vrcp.f32 %v802_v0  ;;  %v804_v4 = vadd.f32 1.0, %v1227_v3 }
 0x11c   : > { %1232 = vrcp.f32 %v803_v2 }
 0x11d   : > { %827 = vrot.lane.b32.xlu1 %v818_v55, %s1254_s25  ;;  %1234 = vrcp.f32 %v804_v4 }
 0x121   : > { %831 = vrot.lane.b32.xlu1 %v820_v56, %s1254_s25 }
 0x124   : > { %v1229_v5 = vpop.eup %1228 }
 0x125   : > { %v1231_v8 = vpop.eup %1230 }
 0x126   : > { %v1233_v11 = vpop.eup %1232 }
 0x127   : > { %v1235_v14 = vpop.eup %1234 }
 0x17f   : > { %v846_v6 = vpop.permute.xlu0 %845 }
 0x180   : > { %v857_v7 = vmul.f32 %v1229_v5, %v846_v6 }
 0x182   : > { %865 = vrot.lane.b32.xlu0 %v857_v7, %s1254_s25 }
 0x183   : > { %v848_v9 = vpop.permute.xlu0 %847 }
 0x184   : > { %v858_v10 = vmul.f32 %v1231_v8, %v848_v9 }
 0x186   : > { %867 = vrot.lane.b32.xlu1 %v858_v10, %s1254_s25 }
 0x187   : > { %v850_v12 = vpop.permute.xlu1 %849  ;;  %v826_v17 = vpop.permute.xlu0 %825 }
 0x188   : > { %v859_v13 = vmul.f32 %v1233_v11, %v850_v12  ;;  %v837_v20 = vmul.f32 %v1229_v5, %v826_v17 }
 0x18a   : > { %869 = vrot.lane.b32.xlu0 %v859_v13, %s1254_s25 }
 0x18b   : > { %v852_v15 = vpop.permute.xlu1 %851  ;;  %v830_v19 = vpop.permute.xlu0 %829 }
 0x18c   : > { %v860_v16 = vmul.f32 %v1235_v14, %v852_v15  ;;  %v839_v27 = vmul.f32 %v1233_v11, %v830_v19 }
 0x18e   : > { %871 = vrot.lane.b32.xlu1 %v860_v16, %s1254_s25 }
 0x18f   : > { %v828_v18 = vpop.permute.xlu1 %827 }
 0x190   : > { %v838_v24 = vmul.f32 %v1231_v8, %v828_v18 }
 0x193   : > { %v832_v21 = vpop.permute.xlu1 %831 }
 0x194   : > { %v840_v30 = vmul.f32 %v1235_v14, %v832_v21 }
 0x1f4   : > { %v866_v22 = vpop.permute.xlu0 %865 }
 0x1f5   : > { %v877_v23 = vadd.f32 %v866_v22, %v837_v20 }
 0x1f7   : > { %1236 = vtanh.f32 %v877_v23 }
 0x1f8   : > { %v868_v25 = vpop.permute.xlu1 %867 }
 0x1f9   : > { %v878_v26 = vadd.f32 %v868_v25, %v838_v24 }
 0x1fb   : > { %1238 = vtanh.f32 %v878_v26 }
 0x1fc   : > { %v870_v28 = vpop.permute.xlu0 %869 }
 0x1fd   : > { %v879_v29 = vadd.f32 %v870_v28, %v839_v27 }
 0x1ff   : > { %1240 = vtanh.f32 %v879_v29 }
 0x200   : > { %v872_v31 = vpop.permute.xlu1 %871 }
 0x201   : > { %v1237_v32 = vpop.eup %1236  ;;  %v880_v33 = vadd.f32 %v872_v31, %v840_v30 }
 0x202   : > { %910 = vrot.lane.b32.xlu0 %v1237_v32, %s1255_s17 }
 0x203   : > { %1242 = vtanh.f32 %v880_v33 }
 0x205   : > { %v1239_v34 = vpop.eup %1238 }
 0x206   : > { %912 = vrot.lane.b32.xlu1 %v1239_v34, %s1255_s17 }
 0x209   : > { %v1241_v35 = vpop.eup %1240 }
 0x20a   : > { %914 = vrot.lane.b32.xlu0 %v1241_v35, %s1255_s17 }
 0x20d   : > { %v1243_v36 = vpop.eup %1242 }
 0x20e   : > { %885 = vrot.lane.b32.xlu0 %v877_v23, %s1256_s26  ;;  %916 = vrot.lane.b32.xlu1 %v1243_v36, %s1255_s17 }
 0x212   : > { %889 = vrot.lane.b32.xlu0 %v879_v29, %s1256_s26  ;;  %887 = vrot.lane.b32.xlu1 %v878_v26, %s1256_s26 }
 0x216   : > { %891 = vrot.lane.b32.xlu1 %v880_v33, %s1256_s26 }
 0x274   : > { %v911_v37 = vpop.permute.xlu0 %910 }
 0x275   : > { %v922_v38 = vmul.f32 %v1229_v5, %v911_v37 }
 0x277   : > { %930 = vrot.lane.b32.xlu0 %v922_v38, %s1257_s27 }
 0x278   : > { %v913_v39 = vpop.permute.xlu1 %912 }
 0x279   : > { %v923_v40 = vmul.f32 %v1231_v8, %v913_v39 }
 0x27b   : > { %932 = vrot.lane.b32.xlu1 %v923_v40, %s1257_s27 }
 0x27c   : > { %v915_v41 = vpop.permute.xlu0 %914 }
 0x27d   : > { %v924_v42 = vmul.f32 %v1233_v11, %v915_v41 }
 0x27f   : > { %934 = vrot.lane.b32.xlu0 %v924_v42, %s1257_s27 }
 0x280   : > { %v886_v43 = vpop.permute.xlu0 %885  ;;  %v917_v44 = vpop.permute.xlu1 %916 }
 0x281   : > { %898 = vst.msk [vmem:[%s417_s11] sm:$0xff] %vm897_vm5, %v886_v43  ;;  %v925_v45 = vmul.f32 %v1235_v14, %v917_v44 }
 0x283   : > { %936 = vrot.lane.b32.xlu1 %v925_v45, %s1257_s27 }
 0x284   : > { %v890_v46 = vpop.permute.xlu0 %889  ;;  %v888_v47 = vpop.permute.xlu1 %887 }
 0x285   : > { %900 = vst.msk [vmem:[%s417_s11 + $0x10] sm:$0xff] %vm897_vm5, %v890_v46  ;;  %899 = vst.msk [vmem:[%s417_s11 + $0x8] sm:$0xff] %vm897_vm5, %v888_v47 }
 0x288   : > { %v892_v48 = vpop.permute.xlu1 %891 }
 0x289   : > { %901 = vst.msk [vmem:[%s417_s11 + $0x18] sm:$0xff] %vm897_vm5, %v892_v48 }
 0x2e9   : > { %v931_v49 = vpop.permute.xlu0 %930 }
 0x2ea   : > { %942 = vst.msk [vmem:[%s411_s14] sm:$0xff] %vm897_vm5, %v931_v49 }
 0x2ed   : > { %v933_v50 = vpop.permute.xlu1 %932 }
 0x2ee   : > { %943 = vst.msk [vmem:[%s411_s14 + $0x8] sm:$0xff] %vm897_vm5, %v933_v50 }
 0x2f1   : > { %v935_v51 = vpop.permute.xlu0 %934 }
 0x2f2   : > { %944 = vst.msk [vmem:[%s411_s14 + $0x10] sm:$0xff] %vm897_vm5, %v935_v51 }
 0x2f5   : > { %v937_v52 = vpop.permute.xlu1 %936 }
 0x2f6   : > { %945 = vst.msk [vmem:[%s411_s14 + $0x18] sm:$0xff] %vm897_vm5, %v937_v52 }
 0x2f7 PF: > { %s20_s30 = sadd.s32 1, %s1250_s30  }
 0x2f8   : > { %p17_p4 = scmp.ge.s32.totalorder %s20_s30, 6  }
 0x2fa   :  { %19 = sbr.rel (!%p17_p4) target bundleno = 1 (0x1), region = 103 }

</bundles_post_ra>
